<compile_context>
chip_gen: v7x
topology: tpu7x:2x2x1
jax: 0.10.0
libtpu: 0.0.40
codegen_flags: <defaults>
</compile_context>

<pallas_src>
from functools import partial

import jax
import jax.numpy as jnp
from jax import lax
from jax.experimental import pallas as pl
from jax.experimental.pallas import tpu as pltpu


def _fused_qkv_attention_kernel(x_ref, w_ref, b_ref, o_ref, *, batch, seq, dim):
    """Single-shot fused QKV projection + per-batch attention + residual.

    x_ref: (B*S, D)   w_ref: (D, 3D)   b_ref: (1, 3D)   o_ref: (B*S, D)
    The k-columns of w_ref/b_ref are pre-scaled by 1/sqrt(D) in the wrapper.
    """
    x = x_ref[...]                                                    # (B*S, D)

    # One fused projection: (B*S, D) @ (D, 3D) + (1, 3D)
    qkv = jnp.dot(x, w_ref[...], preferred_element_type=jnp.float32) + b_ref[...]
    q = qkv[:, :dim]                 # residual uses the unscaled q
    k = qkv[:, dim:2 * dim]          # already carries the 1/sqrt(D) scale
    v = qkv[:, 2 * dim:]

    for b in range(batch):           # unrolled: batch is tiny and static
        r0, r1 = b * seq, (b + 1) * seq           # sublane-aligned (seq = 8)
        qb, kb, vb = q[r0:r1], k[r0:r1], v[r0:r1]  # (S, D) each

        # q @ k^T without materializing the transpose: contract dim 1 of both.
        scores = lax.dot_general(
            qb, kb, (((1,), (1,)), ((), ())),
            preferred_element_type=jnp.float32)                       # (S, S)

        m = jnp.max(scores, axis=-1, keepdims=True)
        e = jnp.exp(scores - m)
        inv = pl.reciprocal(jnp.sum(e, axis=-1, keepdims=True), approx=True)
        p = e * inv
        # TODO(synk): torch.nn.functional.dropout(p=0.1) is stochastic; treated
        # as identity (inference semantics) for determinism.

        out_b = jnp.dot(p, vb, preferred_element_type=jnp.float32) + qb  # + temp
        o_ref[r0:r1, :] = out_b.astype(o_ref.dtype)


def model_forward(x, wq, wk, wv, bq, bk, bv, *, scale):
    """x: (B, S, D); w*: (D, D) already transposed to (in, out); b*: (1, D)."""
    B, S, D = x.shape

    # Host-side (XLA, one-time) fusion of the three projections; fold the
    # attention scale into the key projection so the kernel never multiplies
    # the score matrix.
    w_qkv = jnp.concatenate([wq, wk * scale, wv], axis=1)   # (D, 3D)
    b_qkv = jnp.concatenate([bq, bk * scale, bv], axis=1)   # (1, 3D)
    x2d = x.reshape(B * S, D)

    kernel = partial(_fused_qkv_attention_kernel, batch=B, seq=S, dim=D)

    out2d = pl.pallas_call(
        kernel,
        out_shape=jax.ShapeDtypeStruct((B * S, D), x.dtype),
        # Single grid step: whole (tiny) arrays live in VMEM, no pipelining.
        in_specs=[pl.BlockSpec(memory_space=pltpu.MemorySpace.VMEM)] * 3,
        out_specs=pl.BlockSpec(memory_space=pltpu.MemorySpace.VMEM),
    )(x2d, w_qkv, b_qkv)

    # Match the PyTorch module's `query.unsqueeze(1)` that survives the
    # trivial 1-way split/recombine: output shape (B, 1, S, D).
    return out2d.reshape(B, 1, S, D)


def _reference(x, wq, wk, wv, bq, bk, bv, scale):
    q = x @ wq + bq
    k = x @ wk + bk
    v = x @ wv + bv
    scores = jnp.einsum("bsd,btd->bst", q, k) * scale
    p = jax.nn.softmax(scores, axis=-1)
    out = jnp.einsum("bst,btd->bsd", p, v) + q
    return out[:, None, :, :]   # unsqueeze(1)


if __name__ == "__main__":
    # config = {'embedding_dim': 32, 'nb_heads': [32], 'nb_blocks': 1}
    B, S, D = 2, 8, 32
    scale = 1.0 / (D ** 0.5)

    key = jax.random.PRNGKey(0)
    kx, kwq, kwk, kwv, kbq, kbk, kbv = jax.random.split(key, 7)
    bound = 1.0 / (D ** 0.5)   # torch.nn.Linear default init range

    x = jax.random.normal(kx, (B, S, D), dtype=jnp.float32)
    # torch Linear weights are (out, in); pre-transpose to (in, out) for x @ W.
    wq = jax.random.uniform(kwq, (D, D), jnp.float32, -bound, bound).T
    wk = jax.random.uniform(kwk, (D, D), jnp.float32, -bound, bound).T
    wv = jax.random.uniform(kwv, (D, D), jnp.float32, -bound, bound).T
    bq = jax.random.uniform(kbq, (1, D), jnp.float32, -bound, bound)
    bk = jax.random.uniform(kbk, (1, D), jnp.float32, -bound, bound)
    bv = jax.random.uniform(kbv, (1, D), jnp.float32, -bound, bound)

    out = model_forward(x, wq, wk, wv, bq, bk, bv, scale=scale)
    out = jax.block_until_ready(out)

    ref = _reference(x, wq, wk, wv, bq, bk, bv, scale)
    assert out.shape == (B, 1, S, D), out.shape
    # Tolerance loosened vs an exact-divide softmax because the denominator
    # uses the EUP approximate reciprocal (~1e-3 relative error).
    assert jnp.allclose(out, ref, rtol=1e-2, atol=1e-2), "mismatch vs JAX reference"

    print("KERNEL_OK")
</pallas_src>

<mosaic_0001>
module attributes {stable_mosaic.version = 11 : i64} {
  func.func @_fused_qkv_attention_kernel(%arg0: memref<16x32xf32, #tpu.memory_space<vmem>>, %arg1: memref<32x96xf32, #tpu.memory_space<vmem>>, %arg2: memref<1x96xf32, #tpu.memory_space<vmem>>, %arg3: memref<16x32xf32, #tpu.memory_space<vmem>>) attributes {dimension_semantics = [], scalar_prefetch = 0 : i64, scratch_operands = 0 : i64, tpu.core_type = #tpu.core_type<tc>} {
    %c0 = arith.constant 0 : index
    %c0_0 = arith.constant 0 : index
    %0 = vector.load %arg0[%c0, %c0_0] : memref<16x32xf32, #tpu.memory_space<vmem>>, vector<16x32xf32>
    %c0_1 = arith.constant 0 : index
    %c0_2 = arith.constant 0 : index
    %1 = vector.load %arg1[%c0_1, %c0_2] : memref<32x96xf32, #tpu.memory_space<vmem>>, vector<32x96xf32>
    %cst = arith.constant dense<0.000000e+00> : vector<16x96xf32>
    %2 = tpu.matmul %0, %1, %cst {dimension_numbers = #tpu.dot_dimension_numbers<[1], [0], [0], [1], [0, 0, 1, 1], [], []>} : vector<16x32xf32>, vector<32x96xf32>, vector<16x96xf32> -> vector<16x96xf32>
    %c0_3 = arith.constant 0 : index
    %c0_4 = arith.constant 0 : index
    %3 = vector.load %arg2[%c0_3, %c0_4] : memref<1x96xf32, #tpu.memory_space<vmem>>, vector<1x96xf32>
    %4 = vector.broadcast %3 : vector<1x96xf32> to vector<16x96xf32>
    %5 = arith.addf %2, %4 : vector<16x96xf32>
    %6 = vector.extract_strided_slice %5 {offsets = [0, 0], sizes = [16, 32], strides = [1, 1]} : vector<16x96xf32> to vector<16x32xf32>
    %7 = vector.extract_strided_slice %5 {offsets = [0, 32], sizes = [16, 32], strides = [1, 1]} : vector<16x96xf32> to vector<16x32xf32>
    %8 = vector.extract_strided_slice %5 {offsets = [0, 64], sizes = [16, 32], strides = [1, 1]} : vector<16x96xf32> to vector<16x32xf32>
    %9 = vector.extract_strided_slice %6 {offsets = [0, 0], sizes = [8, 32], strides = [1, 1]} : vector<16x32xf32> to vector<8x32xf32>
    %10 = vector.extract_strided_slice %7 {offsets = [0, 0], sizes = [8, 32], strides = [1, 1]} : vector<16x32xf32> to vector<8x32xf32>
    %11 = vector.extract_strided_slice %8 {offsets = [0, 0], sizes = [8, 32], strides = [1, 1]} : vector<16x32xf32> to vector<8x32xf32>
    %cst_5 = arith.constant dense<0.000000e+00> : vector<8x8xf32>
    %12 = tpu.matmul %9, %10, %cst_5 {dimension_numbers = #tpu.dot_dimension_numbers<[1], [1], [0], [0], [0, 0, 1, 0], [], []>} : vector<8x32xf32>, vector<8x32xf32>, vector<8x8xf32> -> vector<8x8xf32>
    %cst_6 = arith.constant dense<0xFF800000> : vector<8xf32>
    %13 = vector.multi_reduction <maximumf>, %12, %cst_6 [1] : vector<8x8xf32> to vector<8xf32>
    %14 = vector.shape_cast %13 : vector<8xf32> to vector<8x1xf32>
    %15 = vector.broadcast %14 : vector<8x1xf32> to vector<8x8xf32>
    %16 = arith.subf %12, %15 : vector<8x8xf32>
    %17 = math.exp %16 : vector<8x8xf32>
    %cst_7 = arith.constant dense<0.000000e+00> : vector<8xf32>
    %18 = vector.multi_reduction <add>, %17, %cst_7 [1] : vector<8x8xf32> to vector<8xf32>
    %19 = vector.shape_cast %18 : vector<8xf32> to vector<8x1xf32>
    %20 = tpu.reciprocal %19 {approx = true} : vector<8x1xf32> -> vector<8x1xf32>
    %21 = vector.broadcast %20 : vector<8x1xf32> to vector<8x8xf32>
    %22 = arith.mulf %17, %21 : vector<8x8xf32>
    %cst_8 = arith.constant dense<0.000000e+00> : vector<8x32xf32>
    %23 = tpu.matmul %22, %11, %cst_8 {dimension_numbers = #tpu.dot_dimension_numbers<[1], [0], [0], [1], [0, 0, 1, 1], [], []>} : vector<8x8xf32>, vector<8x32xf32>, vector<8x32xf32> -> vector<8x32xf32>
    %24 = arith.addf %23, %9 : vector<8x32xf32>
    %c0_9 = arith.constant 0 : index
    %c0_10 = arith.constant 0 : index
    %25 = vector.load %arg3[%c0_9, %c0_10] : memref<16x32xf32, #tpu.memory_space<vmem>>, vector<8x32xf32>
    tpu.vector_store %arg3[%c0_9, %c0_10], %24 {strides = array<i32>} : memref<16x32xf32, #tpu.memory_space<vmem>>, vector<8x32xf32>,
    %26 = vector.extract_strided_slice %6 {offsets = [8, 0], sizes = [8, 32], strides = [1, 1]} : vector<16x32xf32> to vector<8x32xf32>
    %27 = vector.extract_strided_slice %7 {offsets = [8, 0], sizes = [8, 32], strides = [1, 1]} : vector<16x32xf32> to vector<8x32xf32>
    %28 = vector.extract_strided_slice %8 {offsets = [8, 0], sizes = [8, 32], strides = [1, 1]} : vector<16x32xf32> to vector<8x32xf32>
    %cst_11 = arith.constant dense<0.000000e+00> : vector<8x8xf32>
    %29 = tpu.matmul %26, %27, %cst_11 {dimension_numbers = #tpu.dot_dimension_numbers<[1], [1], [0], [0], [0, 0, 1, 0], [], []>} : vector<8x32xf32>, vector<8x32xf32>, vector<8x8xf32> -> vector<8x8xf32>
    %cst_12 = arith.constant dense<0xFF800000> : vector<8xf32>
    %30 = vector.multi_reduction <maximumf>, %29, %cst_12 [1] : vector<8x8xf32> to vector<8xf32>
    %31 = vector.shape_cast %30 : vector<8xf32> to vector<8x1xf32>
    %32 = vector.broadcast %31 : vector<8x1xf32> to vector<8x8xf32>
    %33 = arith.subf %29, %32 : vector<8x8xf32>
    %34 = math.exp %33 : vector<8x8xf32>
    %cst_13 = arith.constant dense<0.000000e+00> : vector<8xf32>
    %35 = vector.multi_reduction <add>, %34, %cst_13 [1] : vector<8x8xf32> to vector<8xf32>
    %36 = vector.shape_cast %35 : vector<8xf32> to vector<8x1xf32>
    %37 = tpu.reciprocal %36 {approx = true} : vector<8x1xf32> -> vector<8x1xf32>
    %38 = vector.broadcast %37 : vector<8x1xf32> to vector<8x8xf32>
    %39 = arith.mulf %34, %38 : vector<8x8xf32>
    %cst_14 = arith.constant dense<0.000000e+00> : vector<8x32xf32>
    %40 = tpu.matmul %39, %28, %cst_14 {dimension_numbers = #tpu.dot_dimension_numbers<[1], [0], [0], [1], [0, 0, 1, 1], [], []>} : vector<8x8xf32>, vector<8x32xf32>, vector<8x32xf32> -> vector<8x32xf32>
    %41 = arith.addf %40, %26 : vector<8x32xf32>
    %c8 = arith.constant 8 : index
    %c0_15 = arith.constant 0 : index
    %42 = vector.load %arg3[%c8, %c0_15] : memref<16x32xf32, #tpu.memory_space<vmem>>, vector<8x32xf32>
    tpu.vector_store %arg3[%c8, %c0_15], %41 {strides = array<i32>} : memref<16x32xf32, #tpu.memory_space<vmem>>, vector<8x32xf32>,
    return
  }
}

</mosaic_0001>

<bundles_post_ra>
// kernel: tpu_custom_call.1
= control target key start
LH: loop header
LB: loop body
LE: loop exit
PB: predicated region body
PF: predicated region fallthrough
CT: control target
= control target key end

     0   :  { %8 = vsyncpa [#allocation3], 0  ;;  %s733_s0 = inlined_call_operand.hbm [shape: f32[16,32], index: 0, kind: input, shape index: {}]   ;;  %s734_s1 = inlined_call_operand.hbm [shape: f32[32,96], index: 1, kind: input, shape index: {}]   ;;  %s735_s2 = inlined_call_operand.vmem [shape: f32[1,96], index: 2, kind: input, shape index: {}]   ;;  %s736_s3 = inlined_call_operand.hbm [shape: f32[16,32], index: 3, kind: output, shape index: {}]  }
   0x1   :  { %9 = vsyncpa [#allocation6], 0 }
   0x2   :  { %10 = vsyncpa [#allocation4], 0  ;;  %s638_s12 = smov [#allocation2]   ;;  %s566_s16 = scalar_lea.hbm %s733_s0, 256 }
   0x3   :  { %s16_s13 = sshll.u32 %s638_s12, 4  ;;  %p567_p0 = scmp.ne.s32.totalorder %s733_s0, %s566_s16  ;;  %s17_s13 = int_to_ptr.vmem [resolvable:$true] %s16_s13 }
   0x4   :  { %p570_p1 = scmp.lt.u32.totalorder %s566_s16, %s733_s0 }
   0x6   :  { %p572_p2 = pnand %p570_p1, %p567_p0 }
   0x8   :  { %575 = shalt.err (!%p572_p2)
}
   0x9   :  { %s576_s21 = scalar_lea.vmem %s17_s13, 256  ;;  %p581_p4 = scmp.lt.s32.totalorder %s17_s13, %s17_s13 }
   0xa   :  { %p577_p3 = scmp.ne.s32.totalorder %s17_s13, %s576_s21  ;;  %p582_p5 = scmp.lt.s32.totalorder %s576_s21, %s576_s21 }
   0xc   :  { %p583_p6 = por %p582_p5, %p581_p4 }
   0xe   :  { %p584_p7 = pnand %p583_p6, %p577_p3 }
  0x10   :  { %587 = shalt.err (!%p584_p7)
}
  0x11   :  { %s639_s22 = smov 128   ;;  %s640_s23 = smov 8  }
  0x12   :  { %22 = dma.hbm_to_vmem [thread:$0]  %s733_s0, 256, %s17_s13, [#allocation3], %s639_s22, %s639_s22, %s640_s23  }
  0x13   :  { %s641_s26 = smov [#allocation5]   ;;  %s588_s30 = scalar_lea.hbm %s734_s1, 512 }
  0x14   :  { %s28_s27 = sshll.u32 %s641_s26, 4  ;;  %p589_p8 = scmp.ne.s32.totalorder %s734_s1, %s588_s30  ;;  %s29_s27 = int_to_ptr.vmem [resolvable:$true] %s28_s27 }
  0x15   :  { %p592_p9 = scmp.lt.u32.totalorder %s588_s30, %s734_s1 }
  0x17   :  { %p594_p10 = pnand %p592_p9, %p589_p8 }
  0x19   :  { %597 = shalt.err (!%p594_p10)
}
  0x1a   :  { %s598_s8 = scalar_lea.vmem %s29_s27, 512  ;;  %p603_p12 = scmp.lt.s32.totalorder %s29_s27, %s29_s27 }
  0x1b   :  { %p599_p11 = scmp.ne.s32.totalorder %s29_s27, %s598_s8  ;;  %p604_p13 = scmp.lt.s32.totalorder %s598_s8, %s598_s8 }
  0x1d   :  { %p605_p0 = por %p604_p13, %p603_p12 }
  0x1f   :  { %p606_p1 = pnand %p605_p0, %p599_p11 }
  0x21   :  { %609 = shalt.err (!%p606_p1)
}
  0x22   :  { %34 = dma.hbm_to_vmem [thread:$0]  %s734_s1, 512, %s29_s27, [#allocation6], %s639_s22, %s639_s22, %s640_s23  }
  0x23   :  { %632 = dma.done.wait [#allocation3], 256  }
  0x24   :  { %633 = vsyncadd [#allocation3], 4294967040 }
  0x25   :  { %634 = dma.done.wait [#allocation6], 512  }
  0x26   :  { %635 = vsyncadd [#allocation6], 4294966784  ;;  %vm56_vm0 = vcmask 261120   ;;  %v45_v0 = vld [vmem:[#allocation5] sm:$0xff]  ;;  %v46_v1 = vld [vmem:[#allocation5 + $0x8] sm:$0xff]  ;;  %v642_v8 = vmov 0.0  }
  0x27   :  { %v47_v2 = vld [vmem:[#allocation5 + $0x10] sm:$0xff]  ;;  %v541_v3 = vpack.c.bf16 %v46_v1, %v45_v0  ;;  %v48_v4 = vld [vmem:[#allocation5 + $0x18] sm:$0xff]  ;;  %521 = vmatprep.subr.mxu1 %v642_v8  ;;  %vm643_vm1 = vmmov 0   ;;  %s644_s11 = smov 96   ;;  %vm215_vm2 = vcmask 64512   ;;  %s646_s12 = smov [#allocation7]  }
  0x28   :  { %v43_v5 = vld [vmem:[#allocation2] sm:$0xff]  ;;  %v545_v6 = vpack.c.bf16 %v48_v4, %v47_v2  ;;  %v44_v7 = vld [vmem:[#allocation2 + $0x8] sm:$0xff]  ;;  %523 = vmatprep.mubr.msk.f32.mxu1 %vm643_vm1, %v642_v8  ;;  %s474_s13 = sshll.u32 %s646_s12, 4  ;;  %s475_s13 = int_to_ptr.vmem [resolvable:$true] %s474_s13 }
  0x29   :  { %518 = vmatprep.mubr.msk.f32.mxu0 %vm56_vm0, %v43_v5  ;;  %542 = vmatprep.subr.bf16.mxu0 %v541_v3  ;;  %v487_v9 = vld [vmem:[%s735_s2] ss:$0 sm:$0xff]  ;;  %s645_s2 = smov 64   ;;  %s610_s14 = scalar_lea.vmem %s475_s13, 256 }
  0x2a   :  { %544 = vmatpush3.bf16.msra.mxu0 %v541_v3  ;;  %p611_p2 = scmp.ne.s32.totalorder %s475_s13, %s610_s14  ;;  %p615_p3 = scmp.lt.s32.totalorder %s475_s13, %s475_s13 }
  0x2b   :  { %546 = vmatprep.subr.bf16.mxu0 %v545_v6  ;;  %p616_p4 = scmp.lt.s32.totalorder %s610_s14, %s610_s14 }
  0x2d   :  { %p617_p5 = por %p616_p4, %p615_p3 }
  0x2e   :  { %548 = vmatpush3.bf16.msra.mxu0 %v545_v6 }
  0x2f   :  { %531 = vmatprep.subr.mxu0 %v642_v8  ;;  %p618_p6 = pnand %p617_p5, %p611_p2 }
  0x31   :  { %519 = vmatmul.mubr.msk.f32.vlgmr.msra.gmra.mrb[0].mxu0 %vm56_vm0, %v44_v7 }
  0x32   :  { %533 = vmatprep.mubr.msk.f32.mxu0 %vm643_vm1, %v642_v8 }
 0x104   :  { %v520_v10 = vpop.f32.mrb[0].mxu0 }
 0x105   :  { %v129_v11 = vpop.f32.mrb[1].mxu0  ;;  %v135_v13 = vadd.f32 %v520_v10, %v487_v9 }
 0x106   :  { %v130_v12 = vadd.f32 %v487_v9, %v129_v11 }
 0x108   :  { %139 = vrot.lane.b32.xlu0 %v130_v12, %s644_s11 }
 0x10c   :  { %305 = vrot.lane.b32.xlu0 %v135_v13, %s644_s11 }
 0x17a   :  { %v140_v14 = vpop.permute.xlu0 %139 }
 0x17b   :  { %522 = vmatpush3.xpose.msk.msra.mxu1 %vm56_vm0, %v140_v14 }
 0x17c   :  { %526 = vmatprep.subr.mxu1 %v642_v8 }
 0x17e   :  { %524 = vmatmul.mubr.msk.f32.vlgmr.msra.gmra.mrb[0].mxu1 %vm56_vm0, %v130_v12  ;;  %v306_v15 = vpop.permute.xlu0 %305 }
 0x17f   :  { %532 = vmatpush3.xpose.msk.msra.mxu0 %vm56_vm0, %v306_v15  ;;  %528 = vmatprep.mubr.msk.f32.mxu1 %vm643_vm1, %v642_v8 }
 0x182   :  { %534 = vmatmul.mubr.msk.f32.vlgmr.msra.gmra.mrb[2].mxu0 %vm56_vm0, %v135_v13 }
 0x251   :  { %v211_v16 = vpop.f32.mrb[0].mxu1 }
 0x252   :  { %v525_v17 = vpop.f32.mrb[1].mxu1  ;;  %v216_v18 = vsel %vm215_vm2, %v211_v16, -inf }
 0x253   :  { %217 = vmax.xlane.f32.xlu1 %v216_v18 }
 0x255   :  { %v377_v19 = vpop.f32.mrb[2].mxu0 }
 0x256   :  { %v535_v20 = vpop.f32.mrb[3].mxu0  ;;  %v381_v21 = vsel %vm215_vm2, %v377_v19, -inf }
 0x257   :  { %382 = vmax.xlane.f32.xlu1 %v381_v21 }
 0x2e0   :  { %v218_v22 = vpop.xlane.xlu1 %217 }
 0x2e1   :  { %v219_v23 = vsub.f32 %v211_v16, %v218_v22 }
 0x2e3   :  { %v220_v24 = vmul.f32 1.442695, %v219_v23 }
 0x2e4   :  { %v383_v25 = vpop.xlane.xlu1 %382 }
 0x2e5   :  { %558 = vpow2.f32 %v220_v24  ;;  %v384_v26 = vsub.f32 %v377_v19, %v383_v25 }
 0x2e7   :  { %v385_v27 = vmul.f32 1.442695, %v384_v26 }
 0x2e9   :  { %560 = vpow2.f32 %v385_v27 }
 0x2ef   :  { %v559_v28 = vpop.eup %558 }
 0x2f0   :  { %v222_v29 = vsel %vm215_vm2, %v559_v28, 0.0 }
 0x2f1   :  { %223 = vadd.xlane.f32.xlu0 %v222_v29 }
 0x2f3   :  { %v561_v30 = vpop.eup %560 }
 0x2f4   :  { %v387_v31 = vsel %vm215_vm2, %v561_v30, 0.0 }
 0x2f5   :  { %388 = vadd.xlane.f32.xlu1 %v387_v31 }
 0x306   :  { %227 = vrot.lane.b32.xlu1 %v130_v12, %s645_s2 }
 0x30a   :  { %392 = vrot.lane.b32.xlu1 %v135_v13, %s645_s2 }
 0x37e   :  { %v224_v32 = vpop.xlane.xlu0 %223 }
 0x37f   :  { %562 = vrcp.f32 %v224_v32 }
 0x382   :  { %v389_v33 = vpop.xlane.xlu1 %388 }
 0x383   :  { %564 = vrcp.f32 %v389_v33 }
 0x386   :  { %v228_v34 = vpop.permute.xlu1 %227 }
 0x387   :  { %527 = vmatpush3.msra.mxu1 %v228_v34 }
 0x388   :  { %536 = vmatprep.subr.mxu1 %v642_v8 }
 0x389   :  { %v563_v35 = vpop.eup %562 }
 0x38a   :  { %v226_v36 = vmul.f32 %v563_v35, %v559_v28  ;;  %v393_v37 = vpop.permute.xlu1 %392 }
 0x38c   :  { %529 = vmatmul.mubr.msk.f32.vlgmr.msra.gmra.mrb[2].mxu1 %vm215_vm2, %v226_v36 }
 0x38d   :  { %v565_v38 = vpop.eup %564  ;;  %537 = vmatpush3.msra.mxu1 %v393_v37  ;;  %538 = vmatprep.mubr.msk.f32.mxu1 %vm643_vm1, %v642_v8 }
 0x38e   :  { %v391_v39 = vmul.f32 %v565_v38, %v561_v30 }
 0x390   :  { %539 = vmatmul.mubr.msk.f32.vlgmr.msra.gmra.mrb[4].mxu1 %vm215_vm2, %v391_v39 }
 0x45f   :  { %v299_v40 = vpop.f32.mrb[2].mxu1 }
 0x460   :  { %v300_v41 = vadd.f32 %v299_v40, %v130_v12  ;;  %v530_v42 = vpop.f32.mrb[3].mxu1 }
 0x462   :  { %303 = vst.msk [vmem:[#allocation7] sm:$0xff] %vm56_vm0, %v300_v41 }
 0x463   :  { %v464_v43 = vpop.f32.mrb[4].mxu1 }
 0x464   :  { %v465_v44 = vadd.f32 %v464_v43, %v135_v13  ;;  %v540_v45 = vpop.f32.mrb[5].mxu1 }
 0x466   :  { %468 = vst.msk [vmem:[#allocation7 + $0x8] sm:$0xff] %vm56_vm0, %v465_v44 }
 0x467   :  { %621 = shalt.err (!%p618_p6)
}
 0x468   :  { %s622_s17 = scalar_lea.hbm %s736_s3, 256 }
 0x469   :  { %p623_p7 = scmp.ne.s32.totalorder %s736_s3, %s622_s17  ;;  %p626_p8 = scmp.lt.u32.totalorder %s622_s17, %s736_s3 }
 0x46b   :  { %p628_p9 = pnand %p626_p8, %p623_p7 }
 0x46d   :  { %631 = shalt.err (!%p628_p9)
}
 0x46e   :  { %480 = dma.vmem_to_hbm [thread:$0]  %s475_s13, 256, %s736_s3, [#allocation4], %s639_s22, %s639_s22, %s640_s23  }
 0x46f   :  { %636 = dma.done.wait [#allocation4], 256  }
 0x470   :  { %637 = vsyncadd [#allocation4], 4294967040 }
 0x471   :  { %484 = vsyncpa [#allocation3], 1 }
 0x472   :  { %485 = vsyncpa [#allocation6], 1 }
 0x473   :  { %486 = vsyncpa [#allocation4], 1 }

</bundles_post_ra>
